<compile_context>
chip_gen: v5e
topology: v5e:2x2
jax: 0.10.0
libtpu: 0.0.40
codegen_flags: <defaults>
</compile_context>

<pallas_src>
import functools

import numpy as np
import jax
import jax.numpy as jnp
from jax.experimental import pallas as pl
from jax.experimental.pallas import tpu as pltpu


# ---------------------------------------------------------------------------
# Kernel
# ---------------------------------------------------------------------------
def _wide_deep_kernel(n_hidden, embed_ref, wide_ref, *rest):
    """Feature-major Wide&Deep forward for one batch tile.

    refs (in order):
      embed_ref : (D, TB)   bf16  flattened embeddings, batch on lanes (D = F*E)
      wide_ref  : (1, TB)   f32   per-row wide term (sum of linear emb + lin_bias + b_out)
      per hidden layer: w_t (Hout, Hin) bf16 (BN-folded, transposed), b_c (Hout, 1) f32
      w_out_c   : (Hlast,1) f32   output-layer weight column
      out_ref   : (1, TB)   f32   sigmoid scores (lane-dense)
    """
    out_ref = rest[-1]
    params = rest[:-1]

    h = embed_ref[...]                                   # (D, TB) bf16 — MXU operand
    act = None
    for layer in range(n_hidden):
        w_t = params[2 * layer][...]                     # (Hout, Hin) bf16
        b_c = params[2 * layer + 1][...]                 # (Hout, 1)   f32
        z = jnp.dot(w_t, h, preferred_element_type=jnp.float32)   # MXU, f32 accum
        act = jnp.maximum(z + b_c, 0.0)                  # Linear+BN(eval) folded, ReLU (f32)
        h = act.astype(jnp.bfloat16)                     # next MXU operand
        # Dropout(p) is identity at inference.

    # Output layer (Hlast -> 1) done on VPU + XLU: multiply by the weight column and
    # reduce over sublanes -> naturally lane-dense (1, TB) row.  No N=1 MXU matmul.
    w_out_c = params[2 * n_hidden][...]                  # (Hlast, 1) f32
    deep = jnp.sum(act * w_out_c, axis=0, keepdims=True)  # (1, TB) f32

    out_ref[...] = jax.nn.sigmoid(deep + wide_ref[...])


# ---------------------------------------------------------------------------
# Parameters
# ---------------------------------------------------------------------------
def init_params(key, field_dims, embed_dim, mlp_dims):
    """Deterministic parameters matching the PyTorch module's shapes (eval mode)."""
    num_emb = int(np.sum(field_dims))
    num_fields = len(field_dims)
    embed_output_dim = num_fields * embed_dim
    keys = jax.random.split(key, 4 + 4 * len(mlp_dims))
    ki = iter(keys)

    # FeaturesEmbedding: Embedding(sum(field_dims), embed_dim), xavier_uniform
    bound = float(np.sqrt(6.0 / (num_emb + embed_dim)))
    embed_table = jax.random.uniform(next(ki), (num_emb, embed_dim), jnp.float32,
                                     minval=-bound, maxval=bound)

    # FeaturesLinear: Embedding(sum(field_dims), 1) + bias(1,)
    lin_table = jax.random.uniform(next(ki), (num_emb, 1), jnp.float32,
                                   minval=-0.1, maxval=0.1)
    lin_bias = jnp.zeros((1,), jnp.float32)

    # MLP hidden layers: Linear + BatchNorm1d (eval running stats: mean=0, var=1)
    eps = 1e-5
    mlp_hidden = []
    in_dim = embed_output_dim
    for out_dim in mlp_dims:
        lim = float(np.sqrt(1.0 / in_dim))
        w = jax.random.uniform(next(ki), (in_dim, out_dim), jnp.float32,
                               minval=-lim, maxval=lim)
        b = jax.random.uniform(next(ki), (out_dim,), jnp.float32,
                               minval=-lim, maxval=lim)
        gamma = jax.random.uniform(next(ki), (out_dim,), jnp.float32,
                                   minval=0.5, maxval=1.5)
        beta = jax.random.uniform(next(ki), (out_dim,), jnp.float32,
                                  minval=-0.1, maxval=0.1)
        running_mean = jnp.zeros((out_dim,), jnp.float32)
        running_var = jnp.ones((out_dim,), jnp.float32)
        scale = gamma / jnp.sqrt(running_var + eps)
        shift = beta - running_mean * scale
        mlp_hidden.append((w, b, scale, shift))
        in_dim = out_dim

    # MLP output layer: Linear(last_hidden, 1)
    lim = float(np.sqrt(1.0 / in_dim))
    w_out = jax.random.uniform(next(ki), (in_dim, 1), jnp.float32, minval=-lim, maxval=lim)
    b_out = jax.random.uniform(next(ki), (1,), jnp.float32, minval=-lim, maxval=lim)

    offsets = jnp.asarray(np.array((0, *np.cumsum(field_dims)[:-1]), dtype=np.int32))

    return dict(embed_table=embed_table, lin_table=lin_table, lin_bias=lin_bias,
                mlp_hidden=mlp_hidden, w_out=w_out, b_out=b_out, offsets=offsets)


def prepare_params(params):
    """One-time fold: BN(eval)+bias into weights, transpose to (out,in), cast MXU ops to bf16."""
    layers = []
    for (w, b, scale, shift) in params["mlp_hidden"]:
        w_f = w * scale[None, :]                     # fold BN scale into columns
        b_f = b * scale + shift                      # fold BN shift + bias
        layers.append((jnp.asarray(w_f.T, jnp.bfloat16),          # (out, in) bf16
                       jnp.asarray(b_f.reshape(-1, 1), jnp.float32)))   # (out, 1) f32
    return dict(
        embed_table=params["embed_table"],
        lin_table=params["lin_table"],
        offsets=params["offsets"],
        # lin_bias and the MLP output bias are both per-example constants -> fold into wide.
        bias0=(params["lin_bias"][0] + params["b_out"][0]).astype(jnp.float32),
        layers=layers,
        w_out_col=params["w_out"].astype(jnp.float32),            # (last_hidden, 1)
    )


# ---------------------------------------------------------------------------
# Forward
# ---------------------------------------------------------------------------
def wide_and_deep_forward(x, kp, tile_b=256):
    """x: (B, F) int32 field indices -> (B,) f32 sigmoid scores."""
    n_hidden = len(kp["layers"])
    assert n_hidden >= 1

    B, F = x.shape
    idx = x + kp["offsets"][None, :]                                  # (B, F)

    # Data-dependent gathers stay in plain JAX glue (see TODO at top of file).
    embed = jnp.take(kp["embed_table"], idx, axis=0)                  # (B, F, E)
    D = F * embed.shape[-1]
    embed_t = embed.reshape(B, D).astype(jnp.bfloat16).T              # (D, B) feature-major

    lin = jnp.take(kp["lin_table"], idx, axis=0)[..., 0]              # (B, F)
    wide = jnp.sum(lin, axis=1) + kp["bias0"]                         # (B,)

    # Pad batch to a multiple of the tile so every kernel block is full.
    grid_b = pl.cdiv(B, tile_b)
    b_pad = grid_b * tile_b
    if b_pad != B:
        embed_t = jnp.pad(embed_t, ((0, 0), (0, b_pad - B)))
        wide = jnp.pad(wide, (0, b_pad - B))
    wide_row = wide.reshape(1, b_pad).astype(jnp.float32)

    kernel = functools.partial(_wide_deep_kernel, n_hidden)

    inputs = [embed_t, wide_row]
    in_specs = [
        pl.BlockSpec((D, tile_b), lambda i: (0, i)),        # streamed per batch tile
        pl.BlockSpec((1, tile_b), lambda i: (0, i)),        # streamed per batch tile
    ]
    for w_t, b_c in kp["layers"]:                           # weights: resident (const index)
        inputs += [w_t, b_c]
        in_specs += [pl.BlockSpec(w_t.shape, lambda i: (0, 0)),
                     pl.BlockSpec(b_c.shape, lambda i: (0, 0))]
    inputs.append(kp["w_out_col"])
    in_specs.append(pl.BlockSpec(kp["w_out_col"].shape, lambda i: (0, 0)))

    out = pl.pallas_call(
        kernel,
        out_shape=jax.ShapeDtypeStruct((1, b_pad), jnp.float32),
        grid=(grid_b,),
        in_specs=in_specs,
        out_specs=pl.BlockSpec((1, tile_b), lambda i: (0, i)),
        compiler_params=pltpu.CompilerParams(
            dimension_semantics=("parallel",),              # shard batch tiles across TCs (v7x)
            vmem_limit_bytes=32 * 1024 * 1024,              # tiles sized far below v7x's VMEM
        ),
    )(*inputs)
    return out[0, :B]


# ---------------------------------------------------------------------------
# Pure-JAX reference (f32, mirrors PyTorch eval-mode forward)
# ---------------------------------------------------------------------------
def reference_forward(x, params):
    idx = x + params["offsets"][None, :]
    embed = jnp.take(params["embed_table"], idx, axis=0)
    B = x.shape[0]
    h = embed.reshape(B, -1)
    for (w, b, scale, shift) in params["mlp_hidden"]:
        h = jnp.maximum((h @ w + b) * scale + shift, 0.0)
    deep = h @ params["w_out"] + params["b_out"]
    wide = jnp.sum(jnp.take(params["lin_table"], idx, axis=0), axis=1) + params["lin_bias"]
    return jax.nn.sigmoid((wide + deep)[:, 0])


if __name__ == "__main__":
    field_dims = (8, 12, 4)        # 3 fields
    embed_dim = 16                 # embed_output_dim = 48
    mlp_dims = (32, 16)
    batch = 300                    # non-multiple of the tile to exercise padding

    key = jax.random.PRNGKey(0)
    k_param, k_x = jax.random.split(key)
    params = init_params(k_param, field_dims, embed_dim, mlp_dims)
    kparams = prepare_params(params)

    # deterministic synthetic input: per-field category indices
    ks = jax.random.split(k_x, len(field_dims))
    cols = [jax.random.randint(kf, (batch,), 0, d, dtype=jnp.int32)
            for kf, d in zip(ks, field_dims)]
    x = jnp.stack(cols, axis=1)    # (B, F) int32

    fwd = jax.jit(functools.partial(wide_and_deep_forward, tile_b=256))
    out = jax.block_until_ready(fwd(x, kparams))

    ref = reference_forward(x, params)
    assert out.shape == (batch,), out.shape
    # bf16 MXU operands -> loosened tolerance vs the f32 reference.
    np_ok = np.allclose(np.asarray(out), np.asarray(ref), rtol=2e-2, atol=2e-2)
    assert np_ok, "Pallas output mismatch vs JAX reference"
    print("KERNEL_OK")
</pallas_src>

<mosaic_0001>
module attributes {stable_mosaic.version = 11 : i64} {
  func.func @_wide_deep_kernel(%arg0: i32, %arg1: memref<48x256xbf16, #tpu.memory_space<vmem>>, %arg2: memref<1x256xf32, #tpu.memory_space<vmem>>, %arg3: memref<32x48xbf16, #tpu.memory_space<vmem>>, %arg4: memref<32x1xf32, #tpu.memory_space<vmem>>, %arg5: memref<16x32xbf16, #tpu.memory_space<vmem>>, %arg6: memref<16x1xf32, #tpu.memory_space<vmem>>, %arg7: memref<16x1xf32, #tpu.memory_space<vmem>>, %arg8: memref<1x256xf32, #tpu.memory_space<vmem>>) attributes {dimension_semantics = [#tpu.dimension_semantics<parallel>], iteration_bounds = array<i64: 2>, scalar_prefetch = 0 : i64, scratch_operands = 0 : i64, tpu.core_type = #tpu.core_type<tc>, window_params = [{transform_indices = @transform_0, window_bounds = array<i64: 48, 256>}, {transform_indices = @transform_1, window_bounds = array<i64: 1, 256>}, {pipeline_mode = #tpu.pipeline_mode<synchronous>, transform_indices = @transform_2, window_bounds = array<i64: 32, 48>}, {pipeline_mode = #tpu.pipeline_mode<synchronous>, transform_indices = @transform_3, window_bounds = array<i64: 32, 1>}, {pipeline_mode = #tpu.pipeline_mode<synchronous>, transform_indices = @transform_4, window_bounds = array<i64: 16, 32>}, {pipeline_mode = #tpu.pipeline_mode<synchronous>, transform_indices = @transform_5, window_bounds = array<i64: 16, 1>}, {pipeline_mode = #tpu.pipeline_mode<synchronous>, transform_indices = @transform_6, window_bounds = array<i64: 16, 1>}, {transform_indices = @transform_7, window_bounds = array<i64: 1, 256>}]} {
    %c0 = arith.constant 0 : index
    %c0_0 = arith.constant 0 : index
    %0 = vector.load %arg1[%c0, %c0_0] : memref<48x256xbf16, #tpu.memory_space<vmem>>, vector<48x256xbf16>
    %c0_1 = arith.constant 0 : index
    %c0_2 = arith.constant 0 : index
    %1 = vector.load %arg3[%c0_1, %c0_2] : memref<32x48xbf16, #tpu.memory_space<vmem>>, vector<32x48xbf16>
    %c0_3 = arith.constant 0 : index
    %c0_4 = arith.constant 0 : index
    %2 = vector.load %arg4[%c0_3, %c0_4] : memref<32x1xf32, #tpu.memory_space<vmem>>, vector<32x1xf32>
    %cst = arith.constant dense<0.000000e+00> : vector<32x256xf32>
    %3 = tpu.matmul %1, %0, %cst {dimension_numbers = #tpu.dot_dimension_numbers<[1], [0], [0], [1], [0, 0, 1, 1], [], []>} : vector<32x48xbf16>, vector<48x256xbf16>, vector<32x256xf32> -> vector<32x256xf32>
    %4 = vector.broadcast %2 : vector<32x1xf32> to vector<32x256xf32>
    %5 = arith.addf %3, %4 : vector<32x256xf32>
    %cst_5 = arith.constant 0.000000e+00 : f32
    %6 = vector.broadcast %cst_5 : f32 to vector<32x256xf32>
    %7 = arith.maximumf %5, %6 : vector<32x256xf32>
    %8 = arith.truncf %7 : vector<32x256xf32> to vector<32x256xbf16>
    %c0_6 = arith.constant 0 : index
    %c0_7 = arith.constant 0 : index
    %9 = vector.load %arg5[%c0_6, %c0_7] : memref<16x32xbf16, #tpu.memory_space<vmem>>, vector<16x32xbf16>
    %c0_8 = arith.constant 0 : index
    %c0_9 = arith.constant 0 : index
    %10 = vector.load %arg6[%c0_8, %c0_9] : memref<16x1xf32, #tpu.memory_space<vmem>>, vector<16x1xf32>
    %cst_10 = arith.constant dense<0.000000e+00> : vector<16x256xf32>
    %11 = tpu.matmul %9, %8, %cst_10 {dimension_numbers = #tpu.dot_dimension_numbers<[1], [0], [0], [1], [0, 0, 1, 1], [], []>} : vector<16x32xbf16>, vector<32x256xbf16>, vector<16x256xf32> -> vector<16x256xf32>
    %12 = vector.broadcast %10 : vector<16x1xf32> to vector<16x256xf32>
    %13 = arith.addf %11, %12 : vector<16x256xf32>
    %cst_11 = arith.constant 0.000000e+00 : f32
    %14 = vector.broadcast %cst_11 : f32 to vector<16x256xf32>
    %15 = arith.maximumf %13, %14 : vector<16x256xf32>
    %c0_12 = arith.constant 0 : index
    %c0_13 = arith.constant 0 : index
    %16 = vector.load %arg7[%c0_12, %c0_13] : memref<16x1xf32, #tpu.memory_space<vmem>>, vector<16x1xf32>
    %17 = vector.broadcast %16 : vector<16x1xf32> to vector<16x256xf32>
    %18 = arith.mulf %15, %17 : vector<16x256xf32>
    %cst_14 = arith.constant dense<0.000000e+00> : vector<256xf32>
    %19 = vector.multi_reduction <add>, %18, %cst_14 [0] : vector<16x256xf32> to vector<256xf32>
    %20 = vector.shape_cast %19 : vector<256xf32> to vector<1x256xf32>
    %c0_15 = arith.constant 0 : index
    %c0_16 = arith.constant 0 : index
    %21 = vector.load %arg2[%c0_15, %c0_16] : memref<1x256xf32, #tpu.memory_space<vmem>>, vector<1x256xf32>
    %22 = arith.addf %20, %21 : vector<1x256xf32>
    %23 = arith.negf %22 : vector<1x256xf32>
    %24 = math.exp %23 : vector<1x256xf32>
    %cst_17 = arith.constant 1.000000e+00 : f32
    %25 = vector.broadcast %cst_17 : f32 to vector<1x256xf32>
    %26 = arith.addf %25, %24 : vector<1x256xf32>
    %27 = arith.divf %25, %26 : vector<1x256xf32>
    %c0_18 = arith.constant 0 : index
    %c0_19 = arith.constant 0 : index
    %28 = vector.load %arg8[%c0_18, %c0_19] : memref<1x256xf32, #tpu.memory_space<vmem>>, vector<1x256xf32>
    tpu.vector_store %arg8[%c0_18, %c0_19], %27 {strides = array<i32>} : memref<1x256xf32, #tpu.memory_space<vmem>>, vector<1x256xf32>,
    return
  }
  func.func @transform_0(%arg0: i32) -> (i32, i32) {
    %c0_i32 = arith.constant 0 : i32
    %c0_i32_0 = arith.constant 0 : i32
    return %c0_i32, %arg0 : i32, i32
  }
  func.func @transform_1(%arg0: i32) -> (i32, i32) {
    %c0_i32 = arith.constant 0 : i32
    %c0_i32_0 = arith.constant 0 : i32
    return %c0_i32, %arg0 : i32, i32
  }
  func.func @transform_2(%arg0: i32) -> (i32, i32) {
    %c0_i32 = arith.constant 0 : i32
    %c0_i32_0 = arith.constant 0 : i32
    %c0_i32_1 = arith.constant 0 : i32
    return %c0_i32, %c0_i32_0 : i32, i32
  }
  func.func @transform_3(%arg0: i32) -> (i32, i32) {
    %c0_i32 = arith.constant 0 : i32
    %c0_i32_0 = arith.constant 0 : i32
    %c0_i32_1 = arith.constant 0 : i32
    return %c0_i32, %c0_i32_0 : i32, i32
  }
  func.func @transform_4(%arg0: i32) -> (i32, i32) {
    %c0_i32 = arith.constant 0 : i32
    %c0_i32_0 = arith.constant 0 : i32
    %c0_i32_1 = arith.constant 0 : i32
    return %c0_i32, %c0_i32_0 : i32, i32
  }
  func.func @transform_5(%arg0: i32) -> (i32, i32) {
    %c0_i32 = arith.constant 0 : i32
    %c0_i32_0 = arith.constant 0 : i32
    %c0_i32_1 = arith.constant 0 : i32
    return %c0_i32, %c0_i32_0 : i32, i32
  }
  func.func @transform_6(%arg0: i32) -> (i32, i32) {
    %c0_i32 = arith.constant 0 : i32
    %c0_i32_0 = arith.constant 0 : i32
    %c0_i32_1 = arith.constant 0 : i32
    return %c0_i32, %c0_i32_0 : i32, i32
  }
  func.func @transform_7(%arg0: i32) -> (i32, i32) {
    %c0_i32 = arith.constant 0 : i32
    %c0_i32_0 = arith.constant 0 : i32
    return %c0_i32, %arg0 : i32, i32
  }
}

</mosaic_0001>

<bundles_post_ra>
// kernel: wide_and_deep_forward.1
= control target key start
LH: loop header
LB: loop body
LE: loop exit
PB: predicated region body
PF: predicated region fallthrough
CT: control target
= control target key end

     0   :  { %s861_s24 = smov 0   ;;  %s863_s25 = smov 0   ;;  %s959_s0 = inlined_call_operand.vmem [shape: bf16[48,512], index: 0, kind: input, shape index: {}]   ;;  %s960_s1 = inlined_call_operand.vmem [shape: f32[1,512], index: 1, kind: input, shape index: {}]   ;;  %s961_s2 = inlined_call_operand.vmem [shape: bf16[32,48], index: 2, kind: input, shape index: {}]   ;;  %s962_s3 = inlined_call_operand.vmem [shape: f32[32,1], index: 3, kind: input, shape index: {}]   ;;  %s963_s4 = inlined_call_operand.vmem [shape: bf16[16,32], index: 4, kind: input, shape index: {}]   ;;  %s964_s5 = inlined_call_operand.vmem [shape: f32[16,1], index: 5, kind: input, shape index: {}]   ;;  %s965_s6 = inlined_call_operand.vmem [shape: f32[16,1], index: 6, kind: input, shape index: {}]   ;;  %s966_s7 = inlined_call_operand.vmem [shape: f32[1,512], index: 7, kind: output, shape index: {}]  }
   0x1   :  { %s865_s26 = smov 0  }
   0x2 LB: > { %s693_s27 = sadd.s32 4294967295, %s818_s26   ;;  %s878_s28 = sadd.s32 1, %s818_s26   ;;  %s818_s26 = sphi %s865_s26, %s971_s26   ;;  %s814_s25 = sphi %s863_s25, %s970_s25   ;;  %s810_s24 = sphi %s861_s24, %s969_s24  }
   0x3   : > { %s21_s29 = ssub.s32 %s818_s26, %s878_s28  ;;  %s24_s30 = sadd.s32 1, %s814_s25 }
   0x4   : > { %p22_p0 = scmp.eq.s32.totalorder %s21_s29, 0  ;;  %p31_p1 = scmp.ne.s32.totalorder %s814_s25, %s810_s24 }
   0x5   : > { %p32_p2 = scmp.eq.s32.totalorder %s818_s26, 0  ;;  %p696_p4 = scmp.ge.s32.totalorder %s818_s26, 2 }
   0x6   : > { %s887_s8 = scalar_select %p22_p0, %s814_s25, %s24_s30  }
   0x7   : > { %p33_p3 = por %p32_p2, %p31_p1  ;;  %229 = sbr.rel (%p696_p4) target bundleno = 22 (0x16), region = 36 }
   0xc   : > { %232 = sbr.rel (!%p33_p3) target bundleno = 22 (0x16), region = 40  ;;  %s234_s9 = sand.u32 (%p33_p3), 1, %s814_s25  }
   0xd   : > { %s748_s10 = sshll.u32 (%p33_p3), %s818_s26, 3  ;;  %s758_s11 = smul.u32 (%p33_p3), 48, %s234_s9 }
   0xe   : > { %s239_s14 = scalar_lea.vmem (%p33_p3), %s959_s0, %s748_s10 }
   0xf   : > { %v278_v0 = vld [vmem:[%s239_s14] sm:$0xff] (%p33_p3)  ;;  %v280_v1 = vld [vmem:[%s239_s14 + $0x10] sm:$0xff] (%p33_p3)  ;;  %s236_s15 = scalar_lea.vmem (%p33_p3), [#allocation2], %s758_s11 }
  0x10   : > { %v282_v2 = vld [vmem:[%s239_s14 + $0x20] sm:$0xff] (%p33_p3)  ;;  %279 = vst [vmem:[%s236_s15] sm:$0xff] (%p33_p3), %v278_v0  ;;  %v284_v3 = vld [vmem:[%s239_s14 + $0x30] sm:$0xff] (%p33_p3) }
  0x11   : > { %281 = vst [vmem:[%s236_s15 + $0x8] sm:$0xff] %v280_v1  ;;  %v286_v4 = vld [vmem:[%s239_s14 + $0x40] sm:$0xff]  ;;  %v288_v5 = vld [vmem:[%s239_s14 + $0x50] sm:$0xff] }
  0x12   : > { %283 = vst [vmem:[%s236_s15 + $0x10] sm:$0xff] %v282_v2 }
  0x13   : > { %285 = vst [vmem:[%s236_s15 + $0x18] sm:$0xff] %v284_v3 }
  0x14   : > { %287 = vst [vmem:[%s236_s15 + $0x20] sm:$0xff] %v286_v4 }
  0x15   : > { %289 = vst [vmem:[%s236_s15 + $0x28] sm:$0xff] %v288_v5 }
  0x16 PF: > { %p699_p5 = scmp.ge.s32.totalorder %s818_s26, 1  ;;  %p302_p6 = scmp.lt.s32.totalorder %s818_s26, 3 }
  0x18   : > { %p303_p7 = pnand %p699_p5, %p302_p6 }
  0x19   : > { %s309_s16 = sand.u32 (!%p303_p7), 1, %s810_s24   ;;  %s700_s23 = sshll.u32 (!%p303_p7), %s693_s27, 1 }
  0x1a   : > { %306 = sbr.rel (%p303_p7) target bundleno = 404 (0x194), region = 82  ;;  %p345_p8 = scmp.lt.s32.totalorder (!%p303_p7), %s700_s23, 3 }
  0x1b   : > { %s759_s21 = smul.u32 (!%p303_p7), 48, %s309_s16 }
  0x1d   : > { %s311_s22 = scalar_lea.vmem (!%p303_p7), [#allocation2], %s759_s21 }
  0x1f   : > { %v367_v6 = vld [vmem:[%s962_s3 + $0x10] sm:$0xff]  ;;  %v365_v7 = vld [vmem:[%s962_s3] sm:$0xff]  ;;  %v820_v8 = vmov 0   ;;  %v754_v10 = vld [vmem:[%s311_s22 + $0x24] sm:$0xf0]  ;;  %vm429_vm0 = vcmask 392192  }
  0x20   : > { %786 = vset.pattern.permute.xlu1 %v820_v8  ;;  %785 = vset.pattern.permute.xlu0 %v820_v8  ;;  %v728_v9 = vld [vmem:[%s311_s22 + $0x20] sm:$0xf]  ;;  %v753_v11 = vld [vmem:[%s311_s22 + $0x24] sm:$0xf]  ;;  %v730_v13 = vld [vmem:[%s311_s22 + $0x28] sm:$0xf0] }
  0x21   : > { %381 = vperm.xlu0 %785, %v367_v6   ;;  %371 = vperm.xlu1 %786, %v365_v7   ;;  %v729_v12 = vor.u32 %v754_v10, %v728_v9  ;;  %v720_v14 = vld [vmem:[%s311_s22 + $0x10] sm:$0xf]  ;;  %v752_v15 = vld [vmem:[%s311_s22 + $0x14] sm:$0xf0]  ;;  %v733_v16 = vor.u32 %v753_v11, %v730_v13  ;;  %v751_v17 = vld [vmem:[%s311_s22 + $0x14] sm:$0xf] }
  0x22   : > { %787 = vset.pattern.permute.xlu2 %v820_v8  ;;  %v722_v18 = vld [vmem:[%s311_s22 + $0x18] sm:$0xf0]  ;;  %v721_v19 = vor.u32 %v752_v15, %v720_v14  ;;  %v712_v23 = vld [vmem:[%s311_s22] sm:$0xf]  ;;  %v750_v24 = vld [vmem:[%s311_s22 + $0x4] sm:$0xf0] }
  0x23   : > { %441 = vmatpush.bf16.msra.mxu0 %v729_v12  ;;  %v368_v20 = vld [vmem:[%s962_s3 + $0x18] sm:$0xff]  ;;  %v366_v21 = vld [vmem:[%s962_s3 + $0x8] sm:$0xff]  ;;  %460 = vmatpush.bf16.msra.mxu1 %v733_v16  ;;  %v725_v22 = vor.u32 %v751_v17, %v722_v18  ;;  %v749_v25 = vld [vmem:[%s311_s22 + $0x4] sm:$0xf]  ;;  %v713_v27 = vor.u32 %v750_v24, %v712_v23  ;;  %vm505_vm1 = vcmask 261120   ;;  %s973_s23 = smov (!%p345_p8, %s700_s23), 3 }
  0x24   : > { %v714_v26 = vld [vmem:[%s311_s22 + $0x8] sm:$0xf0]  ;;  %v755_v29 = vld [vmem:[%s961_s2] sm:$0xff]  ;;  %s347_s24 = scalar_lea.vmem %s960_s1, %s973_s23  ;;  %vm620_vm9 = vcmask 1040384   ;;  %s352_s9 = scalar_lea.vmem %s966_s7, %s973_s23 }
  0x25   : > { %v717_v28 = vor.u32 %v749_v25, %v714_v26  ;;  %v541_v30 = vld [vmem:[%s965_s6] sm:$0xff]  ;;  %v542_v31 = vld [vmem:[%s965_s6 + $0x8] sm:$0xff] }
  0x26   : > { %v756_v32 = vld [vmem:[%s961_s2 + $0x8] sm:$0xff]  ;;  %v488_v35 = vld [vmem:[%s964_s5] sm:$0xff] }
  0x27   : > { %442 = vmatpush.bf16.msra.mxu0 %v721_v19  ;;  %461 = vmatpush.bf16.msra.mxu1 %v725_v22  ;;  %v489_v39 = vld [vmem:[%s964_s5 + $0x8] sm:$0xff]  ;;  %v757_v3 = vld [vmem:[%s963_s4] sm:$0xff] }
  0x28   : > { %492 = vperm.xlu2 %787, %v488_v35  }
  0x29   : > { %386 = vperm.xlu0 %785, %v368_v20   ;;  %376 = vperm.xlu1 %786, %v366_v21  }
  0x2b   : > { %443 = vmatpush.bf16.msra.mxu0 %v713_v27  ;;  %462 = vmatpush.bf16.msra.mxu1 %v717_v28 }
  0x2e   : > { %734 = vmatmul.msk.bf16.vlgmr.msra.gmra.mxu0 %vm429_vm0, %v755_v29  ;;  %736 = vmatmul.msk.bf16.vlgmr.msra.gmra.mxu1 %vm429_vm0, %v755_v29 }
  0x30   : > { %497 = vperm.xlu2 %787, %v489_v39  }
  0x31   : > { %545 = vperm.xlu0 %785, %v541_v30   ;;  %550 = vperm.xlu1 %786, %v542_v31   ;;  %v571_v31 = vld [vmem:[%s347_s24] sm:$0x3] }
  0x3e   : > { %735 = vmatmul.msk.bf16.gmra.mxu0 %vm429_vm0, %v756_v32  ;;  %737 = vmatmul.msk.bf16.gmra.mxu1 %vm429_vm0, %v756_v32 }
  0x82   : > { %v493_v4 = vpop.permute.xlu2 %492 }
  0x8a   : > { %v498_v9 = vpop.permute.xlu2 %497 }
  0x93   : > { %v372_v38 = vpop.permute.xlu1 %371  ;;  %v382_v40 = vpop.permute.xlu0 %381 }
  0x9b   : > { %v377_v43 = vpop.permute.xlu1 %376  ;;  %v387_v45 = vpop.permute.xlu0 %386 }
  0xa3   : > { %v546_v17 = vpop.permute.xlu0 %545  ;;  %v551_v18 = vpop.permute.xlu1 %550 }
  0xab   : > { %v445_v33 = vpop.f32.mrf.mxu0  ;;  %v464_v34 = vpop.f32.mrf.mxu1 }
  0xac   : > { %v446_v53 = vadd.f32 %v445_v33, %v372_v38  ;;  %v465_v56 = vadd.f32 %v464_v34, %v372_v38  ;;  %v574_v38 = vperm.slane %v571_v31, 1 }
  0xae   : > { %v474_v63 = vmax.f32 %v446_v53, 0.0  ;;  %v475_v0 = vmax.f32 %v465_v56, 0.0 }
  0xb3   : > { %v447_v36 = vpop.f32.mrf.mxu0  ;;  %v466_v37 = vpop.f32.mrf.mxu1 }
  0xb4   : > { %v448_v48 = vadd.f32 %v447_v36, %v377_v43  ;;  %v467_v51 = vadd.f32 %v466_v37, %v377_v43  ;;  %v573_v36 = vperm.slane %v571_v31, 0 }
  0xb6   : > { %v476_v59 = vmax.f32 %v448_v48, 0.0  ;;  %v477_v61 = vmax.f32 %v467_v51, 0.0 }
  0xb8   : > { %v482_v1 = vpack.c.bf16 %v476_v59, %v474_v63  ;;  %v483_v2 = vpack.c.bf16 %v477_v61, %v475_v0  ;;  %v623_v0 = vlaneseq }
  0xba   : > { %vm625_vm11 = vcmp.lt.s32.totalorder %v623_v0, 256 }
  0xbb   : > { %v450_v41 = vpop.f32.mrf.mxu0  ;;  %v469_v42 = vpop.f32.mrf.mxu1 }
  0xbc   : > { %v451_v44 = vadd.f32 %v450_v41, %v382_v40  ;;  %v470_v46 = vadd.f32 %v469_v42, %v382_v40 }
  0xbe   : > { %v478_v54 = vmax.f32 %v451_v44, 0.0  ;;  %v479_v57 = vmax.f32 %v470_v46, 0.0 }
  0xc3   : > { %v452_v47 = vpop.f32.mrf.mxu0  ;;  %v471_v50 = vpop.f32.mrf.mxu1 }
  0xc4   : > { %v453_v49 = vadd.f32 %v452_v47, %v387_v45  ;;  %v472_v52 = vadd.f32 %v471_v50, %v387_v45 }
  0xc6   : > { %v480_v55 = vmax.f32 %v453_v49, 0.0  ;;  %v481_v58 = vmax.f32 %v472_v52, 0.0 }
  0xc8   : > { %v484_v60 = vpack.c.bf16 %v480_v55, %v478_v54  ;;  %v485_v62 = vpack.c.bf16 %v481_v58, %v479_v57 }
  0xca   : > { %515 = vmatpush.bf16.msra.mxu2 %v484_v60  ;;  %529 = vmatpush.bf16.msra.mxu3 %v485_v62 }
  0xce   : > { %516 = vmatpush.bf16.msra.mxu2 %v482_v1  ;;  %530 = vmatpush.bf16.msra.mxu3 %v483_v2 }
  0xd1   : > { %742 = vmatmul.msk.bf16.vlgmr.msra.gmra.mxu2 %vm505_vm1, %v757_v3  ;;  %743 = vmatmul.msk.bf16.vlgmr.msra.gmra.mxu3 %vm505_vm1, %v757_v3 }
 0x154   : > { %v518_v5 = vpop.f32.mrf.mxu2  ;;  %v532_v6 = vpop.f32.mrf.mxu3 }
 0x155   : > { %v519_v7 = vadd.f32 %v518_v5, %v493_v4  ;;  %v533_v8 = vadd.f32 %v532_v6, %v493_v4 }
 0x157   : > { %v537_v11 = vmax.f32 %v519_v7, 0.0  ;;  %v538_v14 = vmax.f32 %v533_v8, 0.0 }
 0x159   : > { %v553_v20 = vmul.f32 %v546_v17, %v537_v11  ;;  %v554_v22 = vmul.f32 %v546_v17, %v538_v14 }
 0x15c   : > { %v520_v10 = vpop.f32.mrf.mxu2  ;;  %v534_v13 = vpop.f32.mrf.mxu3 }
 0x15d   : > { %v521_v12 = vadd.f32 %v520_v10, %v498_v9  ;;  %v535_v15 = vadd.f32 %v534_v13, %v498_v9 }
 0x15f   : > { %v539_v16 = vmax.f32 %v521_v12, 0.0  ;;  %v540_v19 = vmax.f32 %v535_v15, 0.0 }
 0x161   : > { %v555_v21 = vmul.f32 %v551_v18, %v539_v16  ;;  %v556_v23 = vmul.f32 %v551_v18, %v540_v19 }
 0x163   : > { %v557_v24 = vadd.f32 %v555_v21, %v553_v20  ;;  %v564_v25 = vadd.f32 %v556_v23, %v554_v22 }
 0x165   : > { %v558_v26 = vrot.slane %v557_v24, 4  ;;  %v565_v27 = vrot.slane %v564_v25, 4 }
 0x167   : > { %v559_v28 = vadd.f32 %v558_v26, %v557_v24  ;;  %v566_v29 = vadd.f32 %v565_v27, %v564_v25 }
 0x169   : > { %v560_v30 = vrot.slane %v559_v28, 2  ;;  %v567_v32 = vrot.slane %v566_v29, 2 }
 0x16b   : > { %v561_v33 = vadd.f32 %v560_v30, %v559_v28  ;;  %v568_v34 = vadd.f32 %v567_v32, %v566_v29 }
 0x16d   : > { %v562_v35 = vrot.slane %v561_v33, 1  ;;  %v569_v37 = vrot.slane %v568_v34, 1 }
 0x16f   : > { %v563_v39 = vadd.f32 %v562_v35, %v561_v33  ;;  %v570_v40 = vadd.f32 %v569_v37, %v568_v34 }
 0x171   : > { %v577_v41 = vadd.f32 %v573_v36, %v563_v39  ;;  %v578_v42 = vadd.f32 %v574_v38, %v570_v40 }
 0x173   : > { %v744_v43 = vmul.f32 -1.442695, %v577_v41  ;;  %v745_v44 = vmul.f32 -1.442695, %v578_v42 }
 0x175   : > { %788 = vpow2.f32 %v744_v43 }
 0x176   : > { %790 = vpow2.f32 %v745_v44 }
 0x17b   : > { %v789_v45 = vpop.eup %788 }
 0x17c   : > { %v791_v46 = vpop.eup %790  ;;  %v585_v47 = vadd.f32 1.0, %v789_v45 }
 0x17d   : > { %v586_v48 = vadd.f32 1.0, %v791_v46 }
 0x17e   : > { %792 = vrcp.f32 %v585_v47  ;;  %vm592_vm4 = vweird.f32 %v585_v47  ;;  %v598_v60 = vand.u32 2147483648, %v585_v47  ;;  %v596_v62 = vand.u32 2147483647, %v585_v47 }
 0x17f   : > { %794 = vrcp.f32 %v586_v48  ;;  %v613_v56 = vand.u32 2147483648, %v586_v48  ;;  %v611_v58 = vand.u32 2147483647, %v586_v48  ;;  %vm607_vm6 = vweird.f32 %v586_v48 }
 0x180   : > { %v599_v4 = vor.u32 1.1754944e-38, %v598_v60  ;;  %vm597_vm10 = vcmp.eq.f32.partialorder %v596_v62, 8.507059e+37 }
 0x181   : > { %v614_v1 = vor.u32 1.1754944e-38, %v613_v56  ;;  %vm612_vm8 = vcmp.eq.f32.partialorder %v611_v58, 8.507059e+37 }
 0x184   : > { %v793_v49 = vpop.eup %792 }
 0x185   : > { %v795_v50 = vpop.eup %794  ;;  %v588_v51 = vmul.f32 %v793_v49, %v585_v47  ;;  %vm593_vm2 = vweird.f32 %v793_v49 }
 0x186   : > { %v603_v52 = vmul.f32 %v795_v50, %v586_v48  ;;  %vm608_vm3 = vweird.f32 %v795_v50  ;;  %vm939_vm5 = vmor %vm592_vm4, %vm593_vm2 }
 0x187   : > { %v589_v53 = vsub.f32 1.0, %v588_v51  ;;  %vm609_vm7 = vmor %vm607_vm6, %vm608_vm3 }
 0x188   : > { %v604_v54 = vsub.f32 1.0, %v603_v52 }
 0x189   : > { %v590_v55 = vmul.f32 %v793_v49, %v589_v53 }
 0x18a   : > { %v605_v57 = vmul.f32 %v795_v50, %v604_v54 }
 0x18b   : > { %v591_v59 = vadd.f32 %v793_v49, %v590_v55 }
 0x18c   : > { %v606_v63 = vadd.f32 %v795_v50, %v605_v57 }
 0x18d   : > { %v595_v2 = vsel %vm939_vm5, %v793_v49, %v591_v59 }
 0x18e   : > { %v610_v3 = vsel %vm609_vm7, %v795_v50, %v606_v63  ;;  %v600_v7 = vsel %vm597_vm10, %v599_v4, %v595_v2 }
 0x18f   : > { %v615_v5 = vsel %vm612_vm8, %v614_v1, %v610_v3 }
 0x190   : > { %v619_v6 = vrot.slane %v615_v5, 7 }
 0x192   : > { %v621_v8 = vsel %vm620_vm9, %v600_v7, %v619_v6 }
 0x193   : > { %627 = vst.msk [vmem:[%s352_s9] sm:$0x3] %vm625_vm11, %v621_v8 }
 0x194 PF: > { %p14_p9 = scmp.ge.s32.totalorder %s878_s28, 4   ;;  %s969_s24 = smov %s814_s25 }
 0x195   : > { %s970_s25 = smov %s887_s8  ;;  %s971_s26 = smov %s878_s28 }
 0x196   :  { %16 = sbr.rel (!%p14_p9) target bundleno = 2 (0x2), region = 124 }

</bundles_post_ra>
